<compile_context>
chip_gen: v7x
topology: tpu7x:2x2x1
jax: 0.10.0
libtpu: 0.0.40
codegen_flags: <defaults>
</compile_context>

<pallas_src>
import functools

import jax
import jax.numpy as jnp
from jax.experimental import pallas as pl
from jax.experimental.pallas import tpu as pltpu


def _round_up(x, m):
    return (x + m - 1) // m * m


def _loss_kernel(mo_ref, co_ref, pm_ref, pc_ref, nm_ref, nc_ref,   # inputs
                 out_ref,                                           # SMEM scalar
                 pos_ref, neg_ref, pvn_ref,                         # VMEM scratch
                 *, batch, lambda_finetuning, lambda_pvn):
    i = pl.program_id(0)

    # ---- per-tile elementwise pass (VPU/EUP), reduce over embedding dim ----
    mo = jax.nn.sigmoid(mo_ref[...])
    co = jax.nn.sigmoid(co_ref[...])
    pm = jax.nn.sigmoid(pm_ref[...])
    pc = jax.nn.sigmoid(pc_ref[...])
    nm = jax.nn.sigmoid(nm_ref[...])
    nc = jax.nn.sigmoid(nc_ref[...])

    # hoisted std-devs: each sqrt evaluated once (sigmoid can underflow to 0).
    so = jnp.sqrt(jnp.maximum(co, 1e-24))
    sp = jnp.sqrt(jnp.maximum(pc, 1e-24))
    sn = jnp.sqrt(jnp.maximum(nc, 1e-24))

    def row_dist(m1, s1, m2, s2):
        dm = m1 - m2
        ds = s1 - s2
        return jnp.sum(dm * dm + ds * ds, axis=-1)            # [TB]

    # lane-dense resident scratch: tile i fills row i of (num_tiles, TB).
    pos_ref[i, :] = row_dist(mo, so, pm, sp)
    neg_ref[i, :] = row_dist(mo, so, nm, sn)
    pvn_ref[i, :] = row_dist(pm, sp, nm, sn)

    # ---- finalize: global max-abs normalisations + loss sums (last step) ----
    @pl.when(i == pl.num_programs(0) - 1)
    def _finalize():
        nt, tb = pos_ref.shape
        row_idx = (jax.lax.broadcasted_iota(jnp.int32, (nt, tb), 0) * tb
                   + jax.lax.broadcasted_iota(jnp.int32, (nt, tb), 1))
        valid = row_idx < batch                 # mask batch-padding rows

        pos = jnp.where(valid, pos_ref[...], 0.0)
        neg = jnp.where(valid, neg_ref[...], 0.0)
        pvn = jnp.where(valid, pvn_ref[...], 0.0)

        # NOTE: like the PyTorch module, an all-zero tensor here gives 0/0=NaN.
        pos = pos * (1.0 / jnp.max(jnp.abs(pos)))
        neg = neg * (1.0 / jnp.max(jnp.abs(neg)))
        pvn = pvn * (1.0 / jnp.max(jnp.abs(pvn)))

        # fine-tuning loss: -log(sigmoid(d)) == softplus(-d) (stable form).
        d = neg - pos
        ft = jnp.maximum(-d, 0.0) + jnp.log1p(jnp.exp(-jnp.abs(d)))
        ft = jnp.where(valid, ft, 0.0)
        ft = ft * (1.0 / jnp.max(jnp.abs(ft))) * lambda_finetuning
        ft_sum = jnp.sum(ft)

        # pos-vs-neg margin loss.
        pv = jnp.maximum(pos - pvn, 0.0)
        pv = jnp.where(valid, pv, 0.0)
        pv = pv * (1.0 / jnp.max(jnp.abs(pv))) * lambda_pvn
        pv_sum = jnp.sum(pv)

        out_ref[0] = ft_sum + pv_sum


def wasserstein_loss_finetuning(mean_out, cov_out,
                                pos_mean_emb, pos_cov_emb,
                                neg_mean_emb, neg_cov_emb,
                                lambda_finetuning=0.0001, lambda_pvn=0.0001,
                                block_batch=None):
    B, D = mean_out.shape

    # Batch-tile size: 6 inputs x 2 (double buffer) x TB x D x 4B kept under
    # ~16 MiB, leaving headroom inside the explicit 32 MiB VMEM limit (works on
    # v5e/v6e/v7x).
    if block_batch is None:
        vmem_budget = 16 * 1024 * 1024
        tb_cap = max(8, (vmem_budget // (12 * D * 4)) // 8 * 8)
        tb = min(512, tb_cap, _round_up(B, 8))
    else:
        tb = max(8, int(block_batch) // 8 * 8)
    tb = int(min(tb, _round_up(B, 8)))

    padded_b = _round_up(B, tb)
    num_tiles = padded_b // tb

    args = (mean_out, cov_out, pos_mean_emb, pos_cov_emb,
            neg_mean_emb, neg_cov_emb)
    if padded_b != B:
        # zero-pad: sigmoid(0)=0.5 for all six -> zero distances; padded rows
        # are additionally masked in the finalize block.
        args = tuple(jnp.pad(a, ((0, padded_b - B), (0, 0))) for a in args)

    kernel = functools.partial(
        _loss_kernel, batch=B,
        lambda_finetuning=float(lambda_finetuning),
        lambda_pvn=float(lambda_pvn))

    n_elem = padded_b * D
    cost = pl.CostEstimate(flops=40 * n_elem,
                           transcendentals=9 * n_elem,
                           bytes_accessed=6 * n_elem * 4 + 4)

    in_spec = pl.BlockSpec((tb, D), lambda i: (i, 0))
    out = pl.pallas_call(
        kernel,
        out_shape=jax.ShapeDtypeStruct((1,), jnp.float32),
        grid=(num_tiles,),
        in_specs=[in_spec] * 6,
        out_specs=pl.BlockSpec(memory_space=pltpu.MemorySpace.SMEM),
        scratch_shapes=[pltpu.VMEM((num_tiles, tb), jnp.float32)] * 3,
        compiler_params=pltpu.CompilerParams(
            # resident logits scratch + single finalize -> carried (sequential)
            # batch axis.  TODO(synk): two-stage partial-reduce for v7x 2-TC.
            dimension_semantics=("arbitrary",),
            vmem_limit_bytes=32 * 1024 * 1024),
        cost_estimate=cost,
    )(*args)
    return out[0]


def _reference(mean_out, cov_out, pos_mean_emb, pos_cov_emb, neg_mean_emb,
               neg_cov_emb, lambda_finetuning=0.0001, lambda_pvn=0.0001):
    # pure-JAX reference mirroring the PyTorch forward
    s = jax.nn.sigmoid
    mo, co = s(mean_out), s(cov_out)
    pm, pc = s(pos_mean_emb), s(pos_cov_emb)
    nm, nc = s(neg_mean_emb), s(neg_cov_emb)

    def wd(m1, c1, m2, c2):
        ret = jnp.sum((m1 - m2) ** 2, -1)
        s1 = jnp.sqrt(jnp.maximum(c1, 1e-24))
        s2 = jnp.sqrt(jnp.maximum(c2, 1e-24))
        return ret + jnp.sum((s1 - s2) ** 2, -1)

    pos_logits = wd(mo, co, pm, pc)
    neg_logits = wd(mo, co, nm, nc)
    pos_vs_neg = wd(pm, pc, nm, nc)
    pos_logits = pos_logits / jnp.max(jnp.abs(pos_logits))
    neg_logits = neg_logits / jnp.max(jnp.abs(neg_logits))
    pos_vs_neg = pos_vs_neg / jnp.max(jnp.abs(pos_vs_neg))
    loss = -jnp.log(jax.nn.sigmoid(neg_logits - pos_logits + 1e-24))
    loss = jnp.sum(loss / jnp.max(jnp.abs(loss)) * lambda_finetuning)
    pvn = jnp.maximum(pos_logits - pos_vs_neg, 0.0)
    pvn = jnp.sum(pvn / jnp.max(jnp.abs(pvn)) * lambda_pvn)
    return loss + pvn


if __name__ == "__main__":
    D = 32
    k1, k2 = jax.random.split(jax.random.PRNGKey(0))

    # case 1: single-tile path (B=16 -> one (16, 32) block).
    B = 16
    args = [jax.random.normal(k, (B, D), jnp.float32)
            for k in jax.random.split(k1, 6)]
    result = jax.block_until_ready(wasserstein_loss_finetuning(*args))
    ref = _reference(*args)
    assert jnp.allclose(result, ref, rtol=1e-5, atol=1e-7), (result, ref)

    # case 2: multi-tile grid + batch-padding/masking path (B=20, TB=8 -> 3 tiles).
    B2 = 20
    args2 = [jax.random.normal(k, (B2, D), jnp.float32)
             for k in jax.random.split(k2, 6)]
    result2 = jax.block_until_ready(
        wasserstein_loss_finetuning(*args2, block_batch=8))
    ref2 = _reference(*args2)
    assert jnp.allclose(result2, ref2, rtol=1e-5, atol=1e-7), (result2, ref2)

    print("KERNEL_OK")
</pallas_src>

<mosaic_0001>
module attributes {stable_mosaic.version = 11 : i64} {
  func.func @_loss_kernel(%arg0: i32, %arg1: memref<16x32xf32, #tpu.memory_space<vmem>>, %arg2: memref<16x32xf32, #tpu.memory_space<vmem>>, %arg3: memref<16x32xf32, #tpu.memory_space<vmem>>, %arg4: memref<16x32xf32, #tpu.memory_space<vmem>>, %arg5: memref<16x32xf32, #tpu.memory_space<vmem>>, %arg6: memref<16x32xf32, #tpu.memory_space<vmem>>, %arg7: memref<1xf32, #tpu.memory_space<smem>>, %arg8: memref<1x16xf32, #tpu.memory_space<vmem>>, %arg9: memref<1x16xf32, #tpu.memory_space<vmem>>, %arg10: memref<1x16xf32, #tpu.memory_space<vmem>>) attributes {dimension_semantics = [#tpu.dimension_semantics<arbitrary>], iteration_bounds = array<i64: 1>, scalar_prefetch = 0 : i64, scratch_operands = 3 : i64, tpu.core_type = #tpu.core_type<tc>, window_params = [{transform_indices = @transform_0, window_bounds = array<i64: 16, 32>}, {transform_indices = @transform_1, window_bounds = array<i64: 16, 32>}, {transform_indices = @transform_2, window_bounds = array<i64: 16, 32>}, {transform_indices = @transform_3, window_bounds = array<i64: 16, 32>}, {transform_indices = @transform_4, window_bounds = array<i64: 16, 32>}, {transform_indices = @transform_5, window_bounds = array<i64: 16, 32>}, {transform_indices = @transform_6, window_bounds = array<i64: 1>}]} {
    %c0 = arith.constant 0 : index
    %c0_0 = arith.constant 0 : index
    %0 = vector.load %arg1[%c0, %c0_0] : memref<16x32xf32, #tpu.memory_space<vmem>>, vector<16x32xf32>
    %1 = arith.negf %0 : vector<16x32xf32>
    %2 = math.exp %1 : vector<16x32xf32>
    %cst = arith.constant 1.000000e+00 : f32
    %3 = vector.broadcast %cst : f32 to vector<16x32xf32>
    %4 = arith.addf %3, %2 : vector<16x32xf32>
    %5 = arith.divf %3, %4 : vector<16x32xf32>
    %c0_1 = arith.constant 0 : index
    %c0_2 = arith.constant 0 : index
    %6 = vector.load %arg2[%c0_1, %c0_2] : memref<16x32xf32, #tpu.memory_space<vmem>>, vector<16x32xf32>
    %7 = arith.negf %6 : vector<16x32xf32>
    %8 = math.exp %7 : vector<16x32xf32>
    %cst_3 = arith.constant 1.000000e+00 : f32
    %9 = vector.broadcast %cst_3 : f32 to vector<16x32xf32>
    %10 = arith.addf %9, %8 : vector<16x32xf32>
    %11 = arith.divf %9, %10 : vector<16x32xf32>
    %c0_4 = arith.constant 0 : index
    %c0_5 = arith.constant 0 : index
    %12 = vector.load %arg3[%c0_4, %c0_5] : memref<16x32xf32, #tpu.memory_space<vmem>>, vector<16x32xf32>
    %13 = arith.negf %12 : vector<16x32xf32>
    %14 = math.exp %13 : vector<16x32xf32>
    %cst_6 = arith.constant 1.000000e+00 : f32
    %15 = vector.broadcast %cst_6 : f32 to vector<16x32xf32>
    %16 = arith.addf %15, %14 : vector<16x32xf32>
    %17 = arith.divf %15, %16 : vector<16x32xf32>
    %c0_7 = arith.constant 0 : index
    %c0_8 = arith.constant 0 : index
    %18 = vector.load %arg4[%c0_7, %c0_8] : memref<16x32xf32, #tpu.memory_space<vmem>>, vector<16x32xf32>
    %19 = arith.negf %18 : vector<16x32xf32>
    %20 = math.exp %19 : vector<16x32xf32>
    %cst_9 = arith.constant 1.000000e+00 : f32
    %21 = vector.broadcast %cst_9 : f32 to vector<16x32xf32>
    %22 = arith.addf %21, %20 : vector<16x32xf32>
    %23 = arith.divf %21, %22 : vector<16x32xf32>
    %c0_10 = arith.constant 0 : index
    %c0_11 = arith.constant 0 : index
    %24 = vector.load %arg5[%c0_10, %c0_11] : memref<16x32xf32, #tpu.memory_space<vmem>>, vector<16x32xf32>
    %25 = arith.negf %24 : vector<16x32xf32>
    %26 = math.exp %25 : vector<16x32xf32>
    %cst_12 = arith.constant 1.000000e+00 : f32
    %27 = vector.broadcast %cst_12 : f32 to vector<16x32xf32>
    %28 = arith.addf %27, %26 : vector<16x32xf32>
    %29 = arith.divf %27, %28 : vector<16x32xf32>
    %c0_13 = arith.constant 0 : index
    %c0_14 = arith.constant 0 : index
    %30 = vector.load %arg6[%c0_13, %c0_14] : memref<16x32xf32, #tpu.memory_space<vmem>>, vector<16x32xf32>
    %31 = arith.negf %30 : vector<16x32xf32>
    %32 = math.exp %31 : vector<16x32xf32>
    %cst_15 = arith.constant 1.000000e+00 : f32
    %33 = vector.broadcast %cst_15 : f32 to vector<16x32xf32>
    %34 = arith.addf %33, %32 : vector<16x32xf32>
    %35 = arith.divf %33, %34 : vector<16x32xf32>
    %cst_16 = arith.constant 1.000000e-24 : f32
    %36 = vector.broadcast %cst_16 : f32 to vector<16x32xf32>
    %37 = arith.maximumf %11, %36 : vector<16x32xf32>
    %38 = math.sqrt %37 : vector<16x32xf32>
    %cst_17 = arith.constant 1.000000e-24 : f32
    %39 = vector.broadcast %cst_17 : f32 to vector<16x32xf32>
    %40 = arith.maximumf %23, %39 : vector<16x32xf32>
    %41 = math.sqrt %40 : vector<16x32xf32>
    %cst_18 = arith.constant 1.000000e-24 : f32
    %42 = vector.broadcast %cst_18 : f32 to vector<16x32xf32>
    %43 = arith.maximumf %35, %42 : vector<16x32xf32>
    %44 = math.sqrt %43 : vector<16x32xf32>
    %45 = arith.subf %5, %17 : vector<16x32xf32>
    %46 = arith.subf %38, %41 : vector<16x32xf32>
    %47 = arith.mulf %45, %45 : vector<16x32xf32>
    %48 = arith.mulf %46, %46 : vector<16x32xf32>
    %49 = arith.addf %47, %48 : vector<16x32xf32>
    %cst_19 = arith.constant dense<0.000000e+00> : vector<16xf32>
    %50 = vector.multi_reduction <add>, %49, %cst_19 [1] : vector<16x32xf32> to vector<16xf32>
    %51 = arith.index_cast %arg0 : i32 to index
    %c0_20 = arith.constant 0 : index
    %52 = vector.load %arg8[%51, %c0_20] : memref<1x16xf32, #tpu.memory_space<vmem>>, vector<1x16xf32>
    %53 = vector.shape_cast %52 : vector<1x16xf32> to vector<16xf32>
    %54 = vector.shape_cast %50 : vector<16xf32> to vector<1x16xf32>
    tpu.vector_store %arg8[%51, %c0_20], %54 {strides = array<i32>} : memref<1x16xf32, #tpu.memory_space<vmem>>, vector<1x16xf32>,
    %55 = arith.subf %5, %29 : vector<16x32xf32>
    %56 = arith.subf %38, %44 : vector<16x32xf32>
    %57 = arith.mulf %55, %55 : vector<16x32xf32>
    %58 = arith.mulf %56, %56 : vector<16x32xf32>
    %59 = arith.addf %57, %58 : vector<16x32xf32>
    %cst_21 = arith.constant dense<0.000000e+00> : vector<16xf32>
    %60 = vector.multi_reduction <add>, %59, %cst_21 [1] : vector<16x32xf32> to vector<16xf32>
    %61 = arith.index_cast %arg0 : i32 to index
    %c0_22 = arith.constant 0 : index
    %62 = vector.load %arg9[%61, %c0_22] : memref<1x16xf32, #tpu.memory_space<vmem>>, vector<1x16xf32>
    %63 = vector.shape_cast %62 : vector<1x16xf32> to vector<16xf32>
    %64 = vector.shape_cast %60 : vector<16xf32> to vector<1x16xf32>
    tpu.vector_store %arg9[%61, %c0_22], %64 {strides = array<i32>} : memref<1x16xf32, #tpu.memory_space<vmem>>, vector<1x16xf32>,
    %65 = arith.subf %17, %29 : vector<16x32xf32>
    %66 = arith.subf %41, %44 : vector<16x32xf32>
    %67 = arith.mulf %65, %65 : vector<16x32xf32>
    %68 = arith.mulf %66, %66 : vector<16x32xf32>
    %69 = arith.addf %67, %68 : vector<16x32xf32>
    %cst_23 = arith.constant dense<0.000000e+00> : vector<16xf32>
    %70 = vector.multi_reduction <add>, %69, %cst_23 [1] : vector<16x32xf32> to vector<16xf32>
    %71 = arith.index_cast %arg0 : i32 to index
    %c0_24 = arith.constant 0 : index
    %72 = vector.load %arg10[%71, %c0_24] : memref<1x16xf32, #tpu.memory_space<vmem>>, vector<1x16xf32>
    %73 = vector.shape_cast %72 : vector<1x16xf32> to vector<16xf32>
    %74 = vector.shape_cast %70 : vector<16xf32> to vector<1x16xf32>
    tpu.vector_store %arg10[%71, %c0_24], %74 {strides = array<i32>} : memref<1x16xf32, #tpu.memory_space<vmem>>, vector<1x16xf32>,
    %c0_i32 = arith.constant 0 : i32
    %75 = arith.cmpi eq, %arg0, %c0_i32 : i32
    %76 = arith.extui %75 : i1 to i32
    %c0_i32_25 = arith.constant 0 : i32
    %77 = arith.cmpi ne, %76, %c0_i32_25 : i32
    scf.if %77 {
      %78 = tpu.iota {dimensions = array<i32: 0>} : vector<1x16xi32>
      %c16_i32 = arith.constant 16 : i32
      %79 = vector.broadcast %c16_i32 : i32 to vector<1x16xi32>
      %80 = arith.muli %78, %79 : vector<1x16xi32>
      %81 = tpu.iota {dimensions = array<i32: 1>} : vector<1x16xi32>
      %82 = arith.addi %80, %81 : vector<1x16xi32>
      %c16_i32_26 = arith.constant 16 : i32
      %83 = vector.broadcast %c16_i32_26 : i32 to vector<1x16xi32>
      %84 = arith.cmpi slt, %82, %83 : vector<1x16xi32>
      %c0_27 = arith.constant 0 : index
      %c0_28 = arith.constant 0 : index
      %85 = vector.load %arg8[%c0_27, %c0_28] : memref<1x16xf32, #tpu.memory_space<vmem>>, vector<1x16xf32>
      %cst_29 = arith.constant 0.000000e+00 : f32
      %86 = vector.broadcast %cst_29 : f32 to vector<1x16xf32>
      %87 = arith.select %84, %85, %86 : vector<1x16xi1>, vector<1x16xf32>
      %c0_30 = arith.constant 0 : index
      %c0_31 = arith.constant 0 : index
      %88 = vector.load %arg9[%c0_30, %c0_31] : memref<1x16xf32, #tpu.memory_space<vmem>>, vector<1x16xf32>
      %cst_32 = arith.constant 0.000000e+00 : f32
      %89 = vector.broadcast %cst_32 : f32 to vector<1x16xf32>
      %90 = arith.select %84, %88, %89 : vector<1x16xi1>, vector<1x16xf32>
      %c0_33 = arith.constant 0 : index
      %c0_34 = arith.constant 0 : index
      %91 = vector.load %arg10[%c0_33, %c0_34] : memref<1x16xf32, #tpu.memory_space<vmem>>, vector<1x16xf32>
      %cst_35 = arith.constant 0.000000e+00 : f32
      %92 = vector.broadcast %cst_35 : f32 to vector<1x16xf32>
      %93 = arith.select %84, %91, %92 : vector<1x16xi1>, vector<1x16xf32>
      %94 = math.absf %87 : vector<1x16xf32>
      %95 = vector.shape_cast %94 : vector<1x16xf32> to vector<1x1x16xf32>
      %cst_36 = arith.constant dense<0xFF800000> : vector<1xf32>
      %96 = vector.multi_reduction <maximumf>, %95, %cst_36 [1, 2] : vector<1x1x16xf32> to vector<1xf32>
      %97 = vector.shape_cast %96 : vector<1xf32> to vector<1x1x1xf32>
      %98 = vector.extract %97[0, 0, 0] : f32 from vector<1x1x1xf32>
      %cst_37 = arith.constant 1.000000e+00 : f32
      %99 = arith.divf %cst_37, %98 : f32
      %100 = vector.broadcast %99 : f32 to vector<1x16xf32>
      %101 = arith.mulf %87, %100 : vector<1x16xf32>
      %102 = math.absf %90 : vector<1x16xf32>
      %103 = vector.shape_cast %102 : vector<1x16xf32> to vector<1x1x16xf32>
      %cst_38 = arith.constant dense<0xFF800000> : vector<1xf32>
      %104 = vector.multi_reduction <maximumf>, %103, %cst_38 [1, 2] : vector<1x1x16xf32> to vector<1xf32>
      %105 = vector.shape_cast %104 : vector<1xf32> to vector<1x1x1xf32>
      %106 = vector.extract %105[0, 0, 0] : f32 from vector<1x1x1xf32>
      %cst_39 = arith.constant 1.000000e+00 : f32
      %107 = arith.divf %cst_39, %106 : f32
      %108 = vector.broadcast %107 : f32 to vector<1x16xf32>
      %109 = arith.mulf %90, %108 : vector<1x16xf32>
      %110 = math.absf %93 : vector<1x16xf32>
      %111 = vector.shape_cast %110 : vector<1x16xf32> to vector<1x1x16xf32>
      %cst_40 = arith.constant dense<0xFF800000> : vector<1xf32>
      %112 = vector.multi_reduction <maximumf>, %111, %cst_40 [1, 2] : vector<1x1x16xf32> to vector<1xf32>
      %113 = vector.shape_cast %112 : vector<1xf32> to vector<1x1x1xf32>
      %114 = vector.extract %113[0, 0, 0] : f32 from vector<1x1x1xf32>
      %cst_41 = arith.constant 1.000000e+00 : f32
      %115 = arith.divf %cst_41, %114 : f32
      %116 = vector.broadcast %115 : f32 to vector<1x16xf32>
      %117 = arith.mulf %93, %116 : vector<1x16xf32>
      %118 = arith.subf %109, %101 : vector<1x16xf32>
      %cst_42 = arith.constant 0.000000e+00 : f32
      %119 = vector.broadcast %cst_42 : f32 to vector<1x16xf32>
      %120 = arith.subf %119, %118 : vector<1x16xf32>
      %cst_43 = arith.constant 0.000000e+00 : f32
      %121 = vector.broadcast %cst_43 : f32 to vector<1x16xf32>
      %122 = arith.maximumf %120, %121 : vector<1x16xf32>
      %123 = math.absf %118 : vector<1x16xf32>
      %cst_44 = arith.constant 0.000000e+00 : f32
      %124 = vector.broadcast %cst_44 : f32 to vector<1x16xf32>
      %125 = arith.subf %124, %123 : vector<1x16xf32>
      %126 = math.exp %125 : vector<1x16xf32>
      %127 = math.log1p %126 : vector<1x16xf32>
      %128 = arith.addf %122, %127 : vector<1x16xf32>
      %cst_45 = arith.constant 0.000000e+00 : f32
      %129 = vector.broadcast %cst_45 : f32 to vector<1x16xf32>
      %130 = arith.select %84, %128, %129 : vector<1x16xi1>, vector<1x16xf32>
      %131 = math.absf %130 : vector<1x16xf32>
      %132 = vector.shape_cast %131 : vector<1x16xf32> to vector<1x1x16xf32>
      %cst_46 = arith.constant dense<0xFF800000> : vector<1xf32>
      %133 = vector.multi_reduction <maximumf>, %132, %cst_46 [1, 2] : vector<1x1x16xf32> to vector<1xf32>
      %134 = vector.shape_cast %133 : vector<1xf32> to vector<1x1x1xf32>
      %135 = vector.extract %134[0, 0, 0] : f32 from vector<1x1x1xf32>
      %cst_47 = arith.constant 1.000000e+00 : f32
      %136 = arith.divf %cst_47, %135 : f32
      %137 = vector.broadcast %136 : f32 to vector<1x16xf32>
      %138 = arith.mulf %130, %137 : vector<1x16xf32>
      %cst_48 = arith.constant 9.99999974E-5 : f32
      %139 = vector.broadcast %cst_48 : f32 to vector<1x16xf32>
      %140 = arith.mulf %138, %139 : vector<1x16xf32>
      %141 = vector.shape_cast %140 : vector<1x16xf32> to vector<1x1x16xf32>
      %cst_49 = arith.constant dense<0.000000e+00> : vector<1xf32>
      %142 = vector.multi_reduction <add>, %141, %cst_49 [1, 2] : vector<1x1x16xf32> to vector<1xf32>
      %143 = vector.shape_cast %142 : vector<1xf32> to vector<1x1x1xf32>
      %144 = vector.extract %143[0, 0, 0] : f32 from vector<1x1x1xf32>
      %145 = arith.subf %101, %117 : vector<1x16xf32>
      %cst_50 = arith.constant 0.000000e+00 : f32
      %146 = vector.broadcast %cst_50 : f32 to vector<1x16xf32>
      %147 = arith.maximumf %145, %146 : vector<1x16xf32>
      %cst_51 = arith.constant 0.000000e+00 : f32
      %148 = vector.broadcast %cst_51 : f32 to vector<1x16xf32>
      %149 = arith.select %84, %147, %148 : vector<1x16xi1>, vector<1x16xf32>
      %150 = math.absf %149 : vector<1x16xf32>
      %151 = vector.shape_cast %150 : vector<1x16xf32> to vector<1x1x16xf32>
      %cst_52 = arith.constant dense<0xFF800000> : vector<1xf32>
      %152 = vector.multi_reduction <maximumf>, %151, %cst_52 [1, 2] : vector<1x1x16xf32> to vector<1xf32>
      %153 = vector.shape_cast %152 : vector<1xf32> to vector<1x1x1xf32>
      %154 = vector.extract %153[0, 0, 0] : f32 from vector<1x1x1xf32>
      %cst_53 = arith.constant 1.000000e+00 : f32
      %155 = arith.divf %cst_53, %154 : f32
      %156 = vector.broadcast %155 : f32 to vector<1x16xf32>
      %157 = arith.mulf %149, %156 : vector<1x16xf32>
      %cst_54 = arith.constant 9.99999974E-5 : f32
      %158 = vector.broadcast %cst_54 : f32 to vector<1x16xf32>
      %159 = arith.mulf %157, %158 : vector<1x16xf32>
      %160 = vector.shape_cast %159 : vector<1x16xf32> to vector<1x1x16xf32>
      %cst_55 = arith.constant dense<0.000000e+00> : vector<1xf32>
      %161 = vector.multi_reduction <add>, %160, %cst_55 [1, 2] : vector<1x1x16xf32> to vector<1xf32>
      %162 = vector.shape_cast %161 : vector<1xf32> to vector<1x1x1xf32>
      %163 = vector.extract %162[0, 0, 0] : f32 from vector<1x1x1xf32>
      %164 = arith.addf %144, %163 : f32
      %c0_56 = arith.constant 0 : index
      %165 = memref.load %arg7[%c0_56] : memref<1xf32, #tpu.memory_space<smem>>
      memref.store %164, %arg7[%c0_56] : memref<1xf32, #tpu.memory_space<smem>>
    } else {
    }
    return
  }
  func.func @transform_0(%arg0: i32) -> (i32, i32) {
    %c0_i32 = arith.constant 0 : i32
    %c0_i32_0 = arith.constant 0 : i32
    return %arg0, %c0_i32 : i32, i32
  }
  func.func @transform_1(%arg0: i32) -> (i32, i32) {
    %c0_i32 = arith.constant 0 : i32
    %c0_i32_0 = arith.constant 0 : i32
    return %arg0, %c0_i32 : i32, i32
  }
  func.func @transform_2(%arg0: i32) -> (i32, i32) {
    %c0_i32 = arith.constant 0 : i32
    %c0_i32_0 = arith.constant 0 : i32
    return %arg0, %c0_i32 : i32, i32
  }
  func.func @transform_3(%arg0: i32) -> (i32, i32) {
    %c0_i32 = arith.constant 0 : i32
    %c0_i32_0 = arith.constant 0 : i32
    return %arg0, %c0_i32 : i32, i32
  }
  func.func @transform_4(%arg0: i32) -> (i32, i32) {
    %c0_i32 = arith.constant 0 : i32
    %c0_i32_0 = arith.constant 0 : i32
    return %arg0, %c0_i32 : i32, i32
  }
  func.func @transform_5(%arg0: i32) -> (i32, i32) {
    %c0_i32 = arith.constant 0 : i32
    %c0_i32_0 = arith.constant 0 : i32
    return %arg0, %c0_i32 : i32, i32
  }
  func.func @transform_6(%arg0: i32) -> i32 {
    %c0_i32 = arith.constant 0 : i32
    %c0_i32_0 = arith.constant 0 : i32
    return %c0_i32 : i32
  }
}

</mosaic_0001>

<bundles_post_ra>
// kernel: tpu_custom_call.1
= control target key start
LH: loop header
LB: loop body
LE: loop exit
PB: predicated region body
PF: predicated region fallthrough
CT: control target
= control target key end

     0   :  { %11 = vsyncpa [#allocation6], 0  ;;  %s934_s0 = inlined_call_operand.hbm [shape: f32[16,32], index: 0, kind: input, shape index: {}]   ;;  %s935_s1 = inlined_call_operand.hbm [shape: f32[16,32], index: 1, kind: input, shape index: {}]   ;;  %s936_s2 = inlined_call_operand.hbm [shape: f32[16,32], index: 2, kind: input, shape index: {}]   ;;  %s937_s3 = inlined_call_operand.hbm [shape: f32[16,32], index: 3, kind: input, shape index: {}]   ;;  %s938_s4 = inlined_call_operand.hbm [shape: f32[16,32], index: 4, kind: input, shape index: {}]   ;;  %s939_s5 = inlined_call_operand.vmem [shape: f32[16,32], index: 5, kind: input, shape index: {}]   ;;  %s940_s6 = inlined_call_operand.hbm [shape: f32[1], index: 6, kind: output, shape index: {}]  }
   0x1   :  { %12 = vsyncpa [#allocation9], 0 }
   0x2   :  { %13 = vsyncpa [#allocation12], 0 }
   0x3   :  { %14 = vsyncpa [#allocation7], 0  ;;  %s720_s21 = smov [#allocation8]   ;;  %s721_s23 = smov [#allocation11]  }
   0x4   :  { %s32_s22 = sshll.u32 %s720_s21, 4  ;;  %s56_s24 = sshll.u32 %s721_s23, 4  ;;  %s33_s22 = int_to_ptr.vmem [resolvable:$true] %s32_s22  ;;  %s763_s24 = int_to_ptr.vmem [resolvable:$true] %s56_s24 }
   0x5   :  { %s592_s27 = scalar_lea.hbm %s935_s1, 256 }
   0x6   :  { %p593_p0 = scmp.ne.s32.totalorder %s935_s1, %s592_s27  ;;  %p596_p1 = scmp.lt.u32.totalorder %s592_s27, %s935_s1 }
   0x8   :  { %p598_p2 = pnand %p596_p1, %p593_p0 }
   0xa   :  { %601 = shalt.err (!%p598_p2)
}
   0xb   :  { %s602_s8 = scalar_lea.vmem %s33_s22, 256  ;;  %p607_p4 = scmp.lt.s32.totalorder %s33_s22, %s33_s22 }
   0xc   :  { %p603_p3 = scmp.ne.s32.totalorder %s33_s22, %s602_s8  ;;  %p608_p5 = scmp.lt.s32.totalorder %s602_s8, %s602_s8 }
   0xe   :  { %p609_p6 = por %p608_p5, %p607_p4 }
  0x10   :  { %p610_p7 = pnand %p609_p6, %p603_p3 }
  0x12   :  { %613 = shalt.err (!%p610_p7)
}
  0x13   :  { %s722_s9 = smov 128   ;;  %s723_s10 = smov 8  }
  0x14   :  { %38 = dma.hbm_to_vmem [thread:$0]  %s935_s1, 256, %s33_s22, [#allocation9], %s722_s9, %s722_s9, %s723_s10  }
  0x15   :  { %s614_s15 = scalar_lea.hbm %s937_s3, 256 }
  0x16   :  { %p615_p8 = scmp.ne.s32.totalorder %s937_s3, %s614_s15  ;;  %p618_p9 = scmp.lt.u32.totalorder %s614_s15, %s937_s3 }
  0x18   :  { %p620_p10 = pnand %p618_p9, %p615_p8 }
  0x1a   :  { %623 = shalt.err (!%p620_p10)
}
  0x1b   :  { %s624_s20 = scalar_lea.vmem %s763_s24, 256  ;;  %p629_p12 = scmp.lt.s32.totalorder %s763_s24, %s763_s24 }
  0x1c   :  { %p625_p11 = scmp.ne.s32.totalorder %s763_s24, %s624_s20  ;;  %p630_p13 = scmp.lt.s32.totalorder %s624_s20, %s624_s20 }
  0x1e   :  { %p631_p0 = por %p630_p13, %p629_p12 }
  0x20   :  { %p632_p1 = pnand %p631_p0, %p625_p11 }
  0x22   :  { %635 = shalt.err (!%p632_p1)
}
  0x23   :  { %62 = dma.hbm_to_vmem [thread:$0]  %s937_s3, 256, %s763_s24, [#allocation12], %s722_s9, %s722_s9, %s723_s10  }
  0x24   :  { %s724_s22 = smov [#allocation5]   ;;  %s725_s25 = smov [#allocation10]  }
  0x25   :  { %s20_s23 = sshll.u32 %s724_s22, 4  ;;  %s44_s26 = sshll.u32 %s725_s25, 4  ;;  %s21_s23 = int_to_ptr.vmem [resolvable:$true] %s20_s23  ;;  %s800_s26 = int_to_ptr.vmem [resolvable:$true] %s44_s26 }
  0x26   :  { %s636_s29 = scalar_lea.hbm %s934_s0, 256 }
  0x27   :  { %p637_p2 = scmp.ne.s32.totalorder %s934_s0, %s636_s29  ;;  %p640_p3 = scmp.lt.u32.totalorder %s636_s29, %s934_s0 }
  0x29   :  { %p642_p4 = pnand %p640_p3, %p637_p2 }
  0x2b   :  { %645 = shalt.err (!%p642_p4)
}
  0x2c   :  { %s646_s3 = scalar_lea.vmem %s21_s23, 256  ;;  %p651_p6 = scmp.lt.s32.totalorder %s21_s23, %s21_s23 }
  0x2d   :  { %p647_p5 = scmp.ne.s32.totalorder %s21_s23, %s646_s3  ;;  %p652_p7 = scmp.lt.s32.totalorder %s646_s3, %s646_s3 }
  0x2f   :  { %p653_p8 = por %p652_p7, %p651_p6 }
  0x31   :  { %p654_p9 = pnand %p653_p8, %p647_p5 }
  0x33   :  { %657 = shalt.err (!%p654_p9)
}
  0x34   :  { %26 = dma.hbm_to_vmem [thread:$0]  %s934_s0, 256, %s21_s23, [#allocation6], %s722_s9, %s722_s9, %s723_s10  }
  0x35   :  { %s658_s15 = scalar_lea.hbm %s936_s2, 256 }
  0x36   :  { %p659_p10 = scmp.ne.s32.totalorder %s936_s2, %s658_s15  ;;  %p662_p11 = scmp.lt.u32.totalorder %s658_s15, %s936_s2 }
  0x38   :  { %p664_p12 = pnand %p662_p11, %p659_p10 }
  0x3a   :  { %667 = shalt.err (!%p664_p12)
}
  0x3b   :  { %s668_s20 = scalar_lea.vmem %s800_s26, 256  ;;  %p673_p0 = scmp.lt.s32.totalorder %s800_s26, %s800_s26 }
  0x3c   :  { %p669_p13 = scmp.ne.s32.totalorder %s800_s26, %s668_s20  ;;  %p674_p1 = scmp.lt.s32.totalorder %s668_s20, %s668_s20 }
  0x3e   :  { %p675_p2 = por %p674_p1, %p673_p0 }
  0x40   :  { %p676_p3 = pnand %p675_p2, %p669_p13 }
  0x42   :  { %679 = shalt.err (!%p676_p3)
}
  0x43   :  { %50 = dma.hbm_to_vmem [thread:$0]  %s936_s2, 256, %s800_s26, [#allocation9], %s722_s9, %s722_s9, %s723_s10  }
  0x44   :  { %s726_s21 = smov [#allocation13]   ;;  %s680_s27 = scalar_lea.hbm %s938_s4, 256 }
  0x45   :  { %s68_s22 = sshll.u32 %s726_s21, 4  ;;  %p681_p4 = scmp.ne.s32.totalorder %s938_s4, %s680_s27  ;;  %s69_s22 = int_to_ptr.vmem [resolvable:$true] %s68_s22 }
  0x46   :  { %p684_p5 = scmp.lt.u32.totalorder %s680_s27, %s938_s4 }
  0x48   :  { %p686_p6 = pnand %p684_p5, %p681_p4 }
  0x4a   :  { %689 = shalt.err (!%p686_p6)
}
  0x4b   :  { %s690_s8 = scalar_lea.vmem %s69_s22, 256  ;;  %p695_p8 = scmp.lt.s32.totalorder %s69_s22, %s69_s22 }
  0x4c   :  { %p691_p7 = scmp.ne.s32.totalorder %s69_s22, %s690_s8  ;;  %p696_p9 = scmp.lt.s32.totalorder %s690_s8, %s690_s8 }
  0x4e   :  { %p697_p10 = por %p696_p9, %p695_p8 }
  0x50   :  { %p698_p11 = pnand %p697_p10, %p691_p7 }
  0x52   :  { %701 = shalt.err (!%p698_p11)
}
  0x53   :  { %74 = dma.hbm_to_vmem [thread:$0]  %s938_s4, 256, %s69_s22, [#allocation12], %s722_s9, %s722_s9, %s723_s10  }
  0x54   :  { %712 = dma.done.wait [#allocation6], 256  }
  0x55   :  { %713 = vsyncadd [#allocation6], 4294967040 }
  0x56   :  { %714 = dma.done.wait [#allocation9], 512  }
  0x57   :  { %715 = vsyncadd [#allocation9], 4294966784 }
  0x58   :  { %716 = dma.done.wait [#allocation12], 512  }
  0x59   :  { %717 = vsyncadd [#allocation12], 4294966784  ;;  %v92_v0 = vld [vmem:[#allocation5] sm:$0xff]  ;;  %v106_v1 = vld [vmem:[#allocation8] sm:$0xff]  ;;  %vm234_vm3 = vcmask 261120   ;;  %vm254_vm13 = vcmask 130112  }
  0x5a   :  { %v476_v2 = vmul.f32 -1.442695, %v106_v1  ;;  %v148_v3 = vld [vmem:[#allocation13] sm:$0xff]  ;;  %v134_v5 = vld [vmem:[#allocation11] sm:$0xff]  ;;  %v474_v6 = vmul.f32 -1.442695, %v92_v0 }
  0x5b   :  { %v162_v4 = vld [vmem:[%s939_s5] sm:$0xff]  ;;  %v480_v9 = vmul.f32 -1.442695, %v134_v5  ;;  %v482_v11 = vmul.f32 -1.442695, %v148_v3  ;;  %v163_v13 = vld [vmem:[%s939_s5 + $0x8] sm:$0xff] }
  0x5c   :  { %v484_v7 = vmul.f32 -1.442695, %v162_v4  ;;  %518 = vpow2.f32 %v476_v2  ;;  %v120_v8 = vld [vmem:[#allocation10] sm:$0xff]  ;;  %v107_v10 = vld [vmem:[#allocation8 + $0x8] sm:$0xff]  ;;  %v93_v16 = vld [vmem:[#allocation5 + $0x8] sm:$0xff]  ;;  %vm257_vm14 = vcmask 122880  }
  0x5d   :  { %v477_v12 = vmul.f32 -1.442695, %v107_v10  ;;  %v478_v14 = vmul.f32 -1.442695, %v120_v8  ;;  %v135_v15 = vld [vmem:[#allocation11 + $0x8] sm:$0xff]  ;;  %v149_v18 = vld [vmem:[#allocation13 + $0x8] sm:$0xff] }
  0x5e   :  { %520 = vpow2.f32 %v484_v7  ;;  %v485_v17 = vmul.f32 -1.442695, %v163_v13  ;;  %v481_v19 = vmul.f32 -1.442695, %v135_v15  ;;  %v475_v20 = vmul.f32 -1.442695, %v93_v16 }
  0x5f   :  { %522 = vpow2.f32 %v474_v6  ;;  %v121_v21 = vld [vmem:[#allocation10 + $0x8] sm:$0xff]  ;;  %v483_v22 = vmul.f32 -1.442695, %v149_v18  ;;  %s702_s22 = scalar_lea.hbm %s940_s6, 16 }
  0x60   :  { %524 = vpow2.f32 %v480_v9  ;;  %v479_v24 = vmul.f32 -1.442695, %v121_v21  ;;  %p703_p12 = scmp.ne.s32.totalorder %s940_s6, %s702_s22  ;;  %p706_p13 = scmp.lt.u32.totalorder %s702_s22, %s940_s6 }
  0x61   :  { %526 = vpow2.f32 %v482_v11 }
  0x62   :  { %528 = vpow2.f32 %v477_v12  ;;  %p708_p0 = pnand %p706_p13, %p703_p12 }
  0x63   :  { %530 = vpow2.f32 %v478_v14 }
  0x64   :  { %532 = vpow2.f32 %v485_v17 }
  0x65   :  { %534 = vpow2.f32 %v481_v19 }
  0x66   :  { %v519_v23 = vpop.eup %518  ;;  %536 = vpow2.f32 %v475_v20 }
  0x67   :  { %v114_v25 = vadd.f32 1.0, %v519_v23  ;;  %538 = vpow2.f32 %v483_v22 }
  0x68   :  { %v521_v26 = vpop.eup %520 }
  0x69   :  { %v523_v27 = vpop.eup %522  ;;  %540 = vrcp.f32 %v114_v25  ;;  %v170_v28 = vadd.f32 1.0, %v521_v26 }
  0x6a   :  { %v525_v29 = vpop.eup %524  ;;  %542 = vpow2.f32 %v479_v24  ;;  %v100_v36 = vadd.f32 1.0, %v523_v27 }
  0x6b   :  { %v527_v30 = vpop.eup %526  ;;  %544 = vrcp.f32 %v170_v28  ;;  %v142_v31 = vadd.f32 1.0, %v525_v29 }
  0x6c   :  { %v529_v32 = vpop.eup %528  ;;  %v156_v39 = vadd.f32 1.0, %v527_v30 }
  0x6d   :  { %v531_v33 = vpop.eup %530  ;;  %546 = vrcp.f32 %v142_v31  ;;  %v115_v34 = vadd.f32 1.0, %v529_v32 }
  0x6e   :  { %v533_v35 = vpop.eup %532  ;;  %v128_v41 = vadd.f32 1.0, %v531_v33 }
  0x6f   :  { %548 = vrcp.f32 %v115_v34  ;;  %v171_v37 = vadd.f32 1.0, %v533_v35  ;;  %v535_v38 = vpop.eup %534 }
  0x70   :  { %v537_v40 = vpop.eup %536  ;;  %v143_v42 = vadd.f32 1.0, %v535_v38 }
  0x71   :  { %550 = vrcp.f32 %v171_v37  ;;  %v539_v43 = vpop.eup %538  ;;  %v101_v47 = vadd.f32 1.0, %v537_v40 }
  0x72   :  { %552 = vrcp.f32 %v100_v36  ;;  %v157_v51 = vadd.f32 1.0, %v539_v43 }
  0x73   :  { %v541_v44 = vpop.eup %540  ;;  %554 = vrcp.f32 %v143_v42 }
  0x74   :  { %v543_v45 = vpop.eup %542  ;;  %556 = vrcp.f32 %v156_v39  ;;  %v176_v46 = vmax.f32 %v541_v44, 1e-24 }
  0x75   :  { %v545_v48 = vpop.eup %544  ;;  %558 = vrcp.f32 %v128_v41  ;;  %v129_v53 = vadd.f32 1.0, %v543_v45 }
  0x76   :  { %560 = vrsqrt.f32 %v176_v46  ;;  %v208_v50 = vmax.f32 %v545_v48, 1e-24  ;;  %vm180_vm0 = vcmp.eq.f32.partialorder %v176_v46, inf  ;;  %v183_v1 = vand.u32 2147483648, %v176_v46 }
  0x77   :  { %v547_v49 = vpop.eup %546  ;;  %562 = vrcp.f32 %v101_v47  ;;  %vm182_vm1 = vcmp.eq.f32.partialorder %v176_v46, 0.0 }
  0x78   :  { %v192_v52 = vmax.f32 %v547_v49, 1e-24  ;;  %564 = vrsqrt.f32 %v208_v50  ;;  %vm212_vm2 = vcmp.eq.f32.partialorder %v208_v50, inf  ;;  %v215_v7 = vand.u32 2147483648, %v208_v50 }
  0x79   :  { %v549_v54 = vpop.eup %548  ;;  %vm214_vm4 = vcmp.eq.f32.partialorder %v208_v50, 0.0 }
  0x7a   :  { %566 = vrsqrt.f32 %v192_v52  ;;  %v177_v56 = vmax.f32 %v549_v54, 1e-24  ;;  %vm196_vm5 = vcmp.eq.f32.partialorder %v192_v52, inf  ;;  %v199_v10 = vand.u32 2147483648, %v192_v52 }
  0x7b   :  { %v551_v55 = vpop.eup %550  ;;  %568 = vrcp.f32 %v157_v51  ;;  %vm198_vm6 = vcmp.eq.f32.partialorder %v192_v52, 0.0 }
  0x7c   :  { %v553_v57 = vpop.eup %552  ;;  %v858_v58 = vmax.f32 %v551_v55, 1e-24  ;;  %570 = vrcp.f32 %v129_v53  ;;  %vm187_vm7 = vcmp.eq.f32.partialorder %v177_v56, inf  ;;  %vm189_vm8 = vcmp.eq.f32.partialorder %v177_v56, 0.0 }
  0x7d   :  { %v555_v59 = vpop.eup %554  ;;  %572 = vrsqrt.f32 %v177_v56  ;;  %v190_v21 = vand.u32 2147483648, %v177_v56 }
  0x7e   :  { %v860_v60 = vpop.eup %556  ;;  %574 = vrsqrt.f32 %v858_v58  ;;  %v865_v62 = vmax.f32 %v555_v59, 1e-24  ;;  %vm219_vm9 = vcmp.eq.f32.partialorder %v858_v58, inf  ;;  %v222_v26 = vand.u32 2147483648, %v858_v58 }
  0x7f   :  { %v863_v61 = vpop.eup %558  ;;  %v259_v2 = vsub.f32 %v553_v57, %v860_v60  ;;  %vm221_vm10 = vcmp.eq.f32.partialorder %v858_v58, 0.0 }
  0x80   :  { %v561_v63 = vpop.eup %560  ;;  %576 = vrsqrt.f32 %v865_v62  ;;  %v224_v4 = vsub.f32 %v553_v57, %v863_v61  ;;  %vm203_vm11 = vcmp.eq.f32.partialorder %v865_v62, inf  ;;  %v206_v37 = vand.u32 2147483648, %v865_v62 }
  0x81   :  { %v179_v0 = vmul.f32 %v561_v63, %v176_v46  ;;  %v563_v3 = vpop.eup %562  ;;  %v263_v13 = vmul.f32 %v259_v2, %v259_v2  ;;  %vm205_vm12 = vcmp.eq.f32.partialorder %v865_v62, 0.0 }
  0x82   :  { %v565_v5 = vpop.eup %564  ;;  %v228_v17 = vmul.f32 %v224_v4, %v224_v4 }
  0x83   :  { %v181_v6 = vsel %vm180_vm0, %v176_v46, %v179_v0  ;;  %v211_v9 = vmul.f32 %v565_v5, %v208_v50 }
  0x84   :  { %v567_v8 = vpop.eup %566  ;;  %v184_v12 = vsel %vm182_vm1, %v183_v1, %v181_v6  ;;  %v243_v6 = vlaneseq }
  0x85   :  { %v569_v11 = vpop.eup %568  ;;  %v195_v14 = vmul.f32 %v567_v8, %v192_v52  ;;  %v213_v16 = vsel %vm212_vm2, %v208_v50, %v211_v9 }
  0x86   :  { %v571_v15 = vpop.eup %570  ;;  %v216_v19 = vsel %vm214_vm4, %v215_v7, %v213_v16  ;;  %v260_v29 = vsub.f32 %v563_v3, %v569_v11  ;;  %v244_v7 = vand.u32 127, %v243_v6  ;;  %v246_v8 = vshrl.u32 %v243_v6, 7 }
  0x87   :  { %v573_v18 = vpop.eup %572  ;;  %v197_v20 = vsel %vm196_vm5, %v192_v52, %v195_v14  ;;  %v261_v23 = vsub.f32 %v184_v12, %v216_v19  ;;  %v225_v32 = vsub.f32 %v563_v3, %v571_v15 }
  0x88   :  { %v575_v22 = vpop.eup %574  ;;  %v200_v24 = vsel %vm198_vm6, %v199_v10, %v197_v20  ;;  %v186_v25 = vmul.f32 %v573_v18, %v177_v56  ;;  %v264_v43 = vmul.f32 %v260_v29, %v260_v29  ;;  %v249_v9 = vadd.s32 4294967288, %v244_v7 }
  0x89   :  { %v226_v27 = vsub.f32 %v184_v12, %v200_v24  ;;  %v218_v28 = vmul.f32 %v575_v22, %v858_v58  ;;  %v265_v30 = vmul.f32 %v261_v23, %v261_v23  ;;  %v229_v50 = vmul.f32 %v225_v32, %v225_v32 }
  0x8a   :  { %v188_v31 = vsel %vm187_vm7, %v177_v56, %v186_v25  ;;  %v577_v33 = vpop.eup %576  ;;  %v289_v56 = vsub.f32 %v571_v15, %v569_v11  ;;  %v290_v59 = vsub.f32 %v200_v24, %v216_v19  ;;  %v247_v11 = vsub.s32 %v244_v7, %v246_v8 }
  0x8b   :  { %v230_v34 = vmul.f32 %v226_v27, %v226_v27  ;;  %v191_v35 = vsel %vm189_vm8, %v190_v21, %v188_v31  ;;  %v220_v36 = vsel %vm219_vm9, %v858_v58, %v218_v28  ;;  %v267_v38 = vadd.f32 %v265_v30, %v263_v13 }
  0x8c   :  { %v223_v39 = vsel %vm221_vm10, %v222_v26, %v220_v36  ;;  %v202_v40 = vmul.f32 %v577_v33, %v865_v62  ;;  %v288_v58 = vsub.f32 %v863_v61, %v860_v60  ;;  %v294_v1 = vmul.f32 %v290_v59, %v290_v59 }
  0x8d   :  { %v232_v41 = vadd.f32 %v230_v34, %v228_v17  ;;  %v262_v42 = vsub.f32 %v191_v35, %v223_v39  ;;  %v269_v44 = vsel %vm234_vm3, %v267_v38, 0.0  ;;  %v252_v13 = vsub.s32 %v249_v9, %v246_v8 }
  0x8e   :  { %v204_v45 = vsel %vm203_vm11, %v865_v62, %v202_v40  ;;  %270 = vadd.xlane.f32.xlu1 %v269_v44  ;;  %v293_v62 = vmul.f32 %v289_v56, %v289_v56  ;;  %v292_v0 = vmul.f32 %v288_v58, %v288_v58  ;;  %v323_v15 = vmul.u32 16, %v246_v8 }
  0x8f   :  { %v235_v46 = vsel %vm234_vm3, %v232_v41, 0.0  ;;  %v266_v47 = vmul.f32 %v262_v42, %v262_v42  ;;  %v207_v48 = vsel %vm205_vm12, %v206_v37, %v204_v45 }
  0x90   :  { %236 = vadd.xlane.f32.xlu0 %v235_v46  ;;  %v227_v49 = vsub.f32 %v191_v35, %v207_v48  ;;  %v291_v57 = vsub.f32 %v207_v48, %v223_v39  ;;  %v296_v3 = vadd.f32 %v294_v1, %v292_v0  ;;  %v894_v20 = vadd.s32 %v323_v15, %v244_v7 }
  0x91   :  { %v268_v51 = vadd.f32 %v266_v47, %v264_v43 }
  0x92   :  { %v231_v52 = vmul.f32 %v227_v49, %v227_v49  ;;  %v295_v63 = vmul.f32 %v291_v57, %v291_v57  ;;  %v298_v5 = vsel %vm234_vm3, %v296_v3, 0.0  ;;  %vm325_vm15 = vcmp.lt.s32.totalorder %v894_v20, 16 }
  0x93   :  { %v272_v53 = vsel %vm234_vm3, %v268_v51, 0.0 }
  0x94   :  { %273 = vadd.xlane.f32.xlu1 %v272_v53  ;;  %v233_v54 = vadd.f32 %v231_v52, %v229_v50  ;;  %v297_v2 = vadd.f32 %v295_v63, %v293_v62 }
  0x96   :  { %v238_v55 = vsel %vm234_vm3, %v233_v54, 0.0  ;;  %v301_v4 = vsel %vm234_vm3, %v297_v2, 0.0 }
  0x97   :  { %239 = vadd.xlane.f32.xlu0 %v238_v55 }
 0x11b   :  { %v271_v10 = vpop.xlane.xlu1 %270 }
 0x11c   :  { %v280_v60 = vrot.slane %v271_v10, %v247_v11 }
 0x11d   :  { %v237_v12 = vpop.xlane.xlu0 %236 }
 0x11e   :  { %v248_v18 = vrot.slane %v237_v12, %v247_v11 }
 0x121   :  { %v274_v61 = vpop.xlane.xlu1 %273 }
 0x122   :  { %v284_v14 = vrot.slane %v274_v61, %v252_v13 }
 0x124   :  { %v285_v16 = vsel %vm254_vm13, %v284_v14, %v280_v60  ;;  %v240_v17 = vpop.xlane.xlu0 %239 }
 0x125   :  { %287 = vst.msk [vmem:[#allocation3] sm:$0x1] %vm257_vm14, %v285_v16  ;;  %v253_v19 = vrot.slane %v240_v17, %v252_v13 }
 0x127   :  { %v255_v21 = vsel %vm254_vm13, %v253_v19, %v248_v18 }
 0x128   :  { %258 = vst.msk [vmem:[#allocation2] sm:$0x1] %vm257_vm14, %v255_v21 }
 0x12c   :  { %v328_v22 = vld [vmem:[#allocation3] sm:$0x1] }
 0x12d   :  { %v329_v23 = vsel %vm325_vm15, %v328_v22, 0.0 }
 0x12e   :  { %v348_v24 = vand.u32 2147483647, %v329_v23 }
 0x12f   :  { %v326_v25 = vld [vmem:[#allocation2] sm:$0x1] }
 0x130   :  { %v349_v26 = vsel %vm257_vm14, %v348_v24, -inf  ;;  %v327_v27 = vsel %vm325_vm15, %v326_v25, 0.0 }
 0x131   :  { %350 = vmax.xlane.f32.xlu1 %v349_v26  ;;  %v332_v28 = vand.u32 2147483647, %v327_v27 }
 0x133   :  { %v333_v29 = vsel %vm257_vm14, %v332_v28, -inf }
 0x134   :  { %334 = vmax.xlane.f32.xlu0 %v333_v29 }
 0x135   :  { %302 = vadd.xlane.f32.xlu1 %v301_v4 }
 0x138   :  { %299 = vadd.xlane.f32.xlu0 %v298_v5 }
 0x1be   :  { %v351_v30 = vpop.xlane.xlu1 %350 }
 0x1bf   :  { %v352_v47 = vrot.slane %v351_v30, 4 }
 0x1c1   :  { %v335_v31 = vpop.xlane.xlu0 %334  ;;  %v353_v48 = vmax.f32 %v351_v30, %v352_v47 }
 0x1c2   :  { %v336_v32 = vrot.slane %v335_v31, 4  ;;  %v303_v33 = vpop.xlane.xlu1 %302 }
 0x1c3   :  { %v313_v35 = vrot.slane %v303_v33, %v252_v13  ;;  %v354_v49 = vrot.slane %v353_v48, 2 }
 0x1c4   :  { %v337_v34 = vmax.f32 %v335_v31, %v336_v32 }
 0x1c5   :  { %v300_v36 = vpop.xlane.xlu0 %299  ;;  %v355_v51 = vmax.f32 %v353_v48, %v354_v49 }
 0x1c6   :  { %v338_v37 = vrot.slane %v337_v34, 2  ;;  %v309_v38 = vrot.slane %v300_v36, %v247_v11 }
 0x1c7   :  { %v356_v52 = vrot.slane %v355_v51, 1 }
 0x1c8   :  { %v314_v39 = vsel %vm254_vm13, %v313_v35, %v309_v38  ;;  %v339_v40 = vmax.f32 %v337_v34, %v338_v37 }
 0x1c9   :  { %316 = vst.msk [vmem:[#allocation4] sm:$0x1] %vm257_vm14, %v314_v39  ;;  %v357_v54 = vmax.f32 %v355_v51, %v356_v52 }
 0x1ca   :  { %v340_v41 = vrot.slane %v339_v40, 1 }
 0x1cc   :  { %v341_v42 = vmax.f32 %v339_v40, %v340_v41 }
 0x1ce   :  { %486 = vpush %v341_v42 }
 0x1d0   :  { %v330_v43 = vld [vmem:[#allocation4] sm:$0x1] }
 0x1d1   :  { %v909_v44 = vsel %vm325_vm15, %v330_v43, 0.0 }
 0x1d2   :  { %v364_v45 = vand.u32 2147483647, %v909_v44 }
 0x1d4   :  { %v365_v46 = vsel %vm257_vm14, %v364_v45, -inf }
 0x1d5   :  { %366 = vmax.xlane.f32.xlu0 %v365_v46 }
 0x1ff   :  { %s487_s5 = spop %486 }
 0x200   :  { %v343_v50 = vstv %s487_s5 }
 0x201   :  { %578 = vrcp.f32 %v343_v50 }
 0x20b   :  { %v579_v53 = vpop.eup %578 }
 0x20c   :  { %488 = vpush %v579_v53 }
 0x20d   :  { %490 = vpush %v357_v54 }
 0x23d   :  { %s489_s10 = spop %488 }
 0x23e   :  { %s491_s24 = spop %490  ;;  %v346_v2 = vstv %s489_s10 }
 0x23f   :  { %v359_v55 = vstv %s491_s24  ;;  %v347_v4 = vmul.f32 %v346_v2, %v327_v27 }
 0x240   :  { %580 = vrcp.f32 %v359_v55 }
 0x24a   :  { %v581_v56 = vpop.eup %580 }
 0x24b   :  { %492 = vpush %v581_v56 }
 0x262   :  { %v367_v57 = vpop.xlane.xlu0 %366 }
 0x263   :  { %v368_v58 = vrot.slane %v367_v57, 4 }
 0x265   :  { %v369_v59 = vmax.f32 %v367_v57, %v368_v58 }
 0x267   :  { %v370_v62 = vrot.slane %v369_v59, 2 }
 0x269   :  { %v371_v63 = vmax.f32 %v369_v59, %v370_v62 }
 0x26b   :  { %v372_v0 = vrot.slane %v371_v63, 1 }
 0x26d   :  { %v373_v1 = vmax.f32 %v371_v63, %v372_v0 }
 0x26f   :  { %494 = vpush %v373_v1 }
 0x27c   :  { %s493_s12 = spop %492 }
 0x27d   :  { %v362_v3 = vstv %s493_s12 }
 0x27e   :  { %v363_v5 = vmul.f32 %v362_v3, %v329_v23 }
 0x280   :  { %v380_v6 = vsub.f32 %v363_v5, %v347_v4 }
 0x282   :  { %v383_v7 = vand.u32 2147483647, %v380_v6  ;;  %v381_v60 = vsub.f32 0.0, %v380_v6 }
 0x284   :  { %v384_v8 = vsub.f32 0.0, %v383_v7  ;;  %v382_v17 = vmax.f32 %v381_v60, 0.0 }
 0x286   :  { %v385_v9 = vmul.f32 1.442695, %v384_v8 }
 0x288   :  { %582 = vpow2.f32 %v385_v9 }
 0x292   :  { %v583_v10 = vpop.eup %582 }
 0x293   :  { %v387_v11 = vadd.f32 1.0, %v583_v10  ;;  %v390_v12 = vmul.f32 -0.5, %v583_v10  ;;  %v393_v61 = vand.u32 2147483647, %v583_v10 }
 0x295   :  { %584 = vlog2.f32 %v387_v11  ;;  %v391_v13 = vadd.f32 1.0, %v390_v12  ;;  %vm394_vm0 = vcmp.lt.f32.partialorder %v393_v61, 0.0004427343 }
 0x297   :  { %v392_v16 = vmul.f32 %v583_v10, %v391_v13 }
 0x29f   :  { %v585_v14 = vpop.eup %584 }
 0x2a0   :  { %s495_s13 = spop %494  ;;  %v389_v15 = vmul.f32 0.6931472, %v585_v14 }
 0x2a1   :  { %v375_v18 = vstv %s495_s13 }
 0x2a2   :  { %586 = vrcp.f32 %v375_v18  ;;  %v395_v19 = vsel %vm394_vm0, %v392_v16, %v389_v15 }
 0x2a3   :  { %v396_v21 = vadd.f32 %v395_v19, %v382_v17 }
 0x2a5   :  { %v397_v22 = vsel %vm325_vm15, %v396_v21, 0.0 }
 0x2a6   :  { %v398_v23 = vand.u32 2147483647, %v397_v22 }
 0x2a8   :  { %v399_v24 = vsel %vm257_vm14, %v398_v23, -inf }
 0x2a9   :  { %400 = vmax.xlane.f32.xlu1 %v399_v24 }
 0x2ac   :  { %v587_v25 = vpop.eup %586 }
 0x2ad   :  { %496 = vpush %v587_v25 }
 0x2de   :  { %s497_s14 = spop %496 }
 0x2df   :  { %v378_v26 = vstv %s497_s14 }
 0x2e0   :  { %v379_v27 = vmul.f32 %v378_v26, %v909_v44 }
 0x2e2   :  { %v425_v28 = vsub.f32 %v347_v4, %v379_v27 }
 0x2e4   :  { %v426_v29 = vmax.f32 %v425_v28, 0.0 }
 0x2e6   :  { %v427_v30 = vsel %vm325_vm15, %v426_v29, 0.0 }
 0x2e7   :  { %v428_v31 = vand.u32 2147483647, %v427_v30 }
 0x2e9   :  { %v429_v32 = vsel %vm257_vm14, %v428_v31, -inf }
 0x2ea   :  { %430 = vmax.xlane.f32.xlu1 %v429_v32 }
 0x336   :  { %v401_v33 = vpop.xlane.xlu1 %400 }
 0x337   :  { %v402_v34 = vrot.slane %v401_v33, 4 }
 0x339   :  { %v403_v35 = vmax.f32 %v401_v33, %v402_v34 }
 0x33b   :  { %v404_v36 = vrot.slane %v403_v35, 2 }
 0x33d   :  { %v405_v37 = vmax.f32 %v403_v35, %v404_v36 }
 0x33f   :  { %v406_v38 = vrot.slane %v405_v37, 1 }
 0x341   :  { %v407_v39 = vmax.f32 %v405_v37, %v406_v38 }
 0x343   :  { %498 = vpush %v407_v39 }
 0x374   :  { %s499_s15 = spop %498 }
 0x375   :  { %v409_v40 = vstv %s499_s15 }
 0x376   :  { %588 = vrcp.f32 %v409_v40 }
 0x377   :  { %v431_v45 = vpop.xlane.xlu1 %430 }
 0x378   :  { %v432_v46 = vrot.slane %v431_v45, 4 }
 0x37a   :  { %v433_v47 = vmax.f32 %v431_v45, %v432_v46 }
 0x37c   :  { %v434_v48 = vrot.slane %v433_v47, 2 }
 0x37e   :  { %v435_v52 = vmax.f32 %v433_v47, %v434_v48 }
 0x380   :  { %v589_v41 = vpop.eup %588  ;;  %v436_v55 = vrot.slane %v435_v52, 1 }
 0x381   :  { %500 = vpush %v589_v41 }
 0x382   :  { %v437_v58 = vmax.f32 %v435_v52, %v436_v55 }
 0x3b2   :  { %s501_s16 = spop %500 }
 0x3b3   :  { %v412_v20 = vstv %s501_s16 }
 0x3b4   :  { %v413_v42 = vmul.f32 %v412_v20, %v397_v22 }
 0x3b6   :  { %v414_v43 = vmul.f32 0.0001, %v413_v42 }
 0x3b8   :  { %v415_v44 = vsel %vm257_vm14, %v414_v43, 0.0 }
 0x3b9   :  { %416 = vadd.xlane.f32.xlu0 %v415_v44 }
 0x446   :  { %v417_v49 = vpop.xlane.xlu0 %416 }
 0x447   :  { %v418_v50 = vrot.slane %v417_v49, 4 }
 0x449   :  { %v419_v51 = vadd.f32 %v418_v50, %v417_v49 }
 0x44b   :  { %v420_v53 = vrot.slane %v419_v51, 2 }
 0x44d   :  { %v421_v54 = vadd.f32 %v420_v53, %v419_v51 }
 0x44f   :  { %v422_v56 = vrot.slane %v421_v54, 1 }
 0x451   :  { %v423_v57 = vadd.f32 %v422_v56, %v421_v54 }
 0x453   :  { %502 = vpush %v423_v57 }
 0x454   :  { %504 = vpush %v437_v58 }
 0x484   :  { %s503_s17 = spop %502 }
 0x485   :  { %s505_s18 = spop %504 }
 0x486   :  { %v439_v59 = vstv %s505_s18 }
 0x487   :  { %590 = vrcp.f32 %v439_v59 }
 0x491   :  { %v591_v62 = vpop.eup %590 }
 0x492   :  { %506 = vpush %v591_v62 }
 0x4c3   :  { %s507_s19 = spop %506 }
 0x4c4   :  { %v442_v63 = vstv %s507_s19 }
 0x4c5   :  { %v443_v0 = vmul.f32 %v442_v63, %v427_v30 }
 0x4c7   :  { %v444_v1 = vmul.f32 0.0001, %v443_v0 }
 0x4c9   :  { %v445_v2 = vsel %vm257_vm14, %v444_v1, 0.0 }
 0x4ca   :  { %446 = vadd.xlane.f32.xlu0 %v445_v2 }
 0x557   :  { %v447_v3 = vpop.xlane.xlu0 %446 }
 0x558   :  { %v448_v4 = vrot.slane %v447_v3, 4 }
 0x55a   :  { %v449_v5 = vadd.f32 %v448_v4, %v447_v3 }
 0x55c   :  { %v450_v6 = vrot.slane %v449_v5, 2 }
 0x55e   :  { %v451_v7 = vadd.f32 %v450_v6, %v449_v5 }
 0x560   :  { %v452_v8 = vrot.slane %v451_v7, 1 }
 0x562   :  { %v453_v9 = vadd.f32 %v452_v8, %v451_v7 }
 0x564   :  { %508 = vpush %v453_v9 }
 0x595   :  { %s509_s20 = spop %508 }
 0x596   :  { %s455_s0 = sadd.f32 %s509_s20, %s503_s17 }
 0x598   :  { %457 = sst [smem:[#allocation14]] %s455_s0 }
 0x599   :  { %711 = shalt.err (!%p708_p0)
}
 0x59a   :  { %s727_s29 = smov [#allocation14]  }
 0x59b   :  { %465 = dma.smem_to_hbm %s727_s29, 16, %s940_s6, [#allocation7]  }
 0x59c   :  { %718 = dma.done.wait [#allocation7], 16  }
 0x59d   :  { %719 = vsyncadd [#allocation7], 4294967280 }
 0x59e   :  { %469 = sfence }
 0x59f   :  { %470 = vsyncpa [#allocation6], 1 }
 0x5a0   :  { %471 = vsyncpa [#allocation9], 1 }
 0x5a1   :  { %472 = vsyncpa [#allocation12], 1 }
 0x5a2   :  { %473 = vsyncpa [#allocation7], 1 }

</bundles_post_ra>
